<compile_context>
chip_gen: v7x
topology: tpu7x:2x2x1
jax: 0.10.0
libtpu: 0.0.40
codegen_flags: <defaults>
</compile_context>

<pallas_src>
import numpy as np

import jax
import jax.numpy as jnp
from jax.experimental import pallas as pl
from jax.experimental.pallas import tpu as pltpu

POOL_SIZES = (6, 3, 2, 1)


# ----------------------------------------------------------------------------
# Host-side construction of the spatial operators (pool / bilinear upsample)
# ----------------------------------------------------------------------------
def adaptive_pool_matrix(in_size, out_size):
    """(out_size, in_size) matrix reproducing torch AdaptiveAvgPool2d bins."""
    P = np.zeros((out_size, in_size), np.float32)
    for i in range(out_size):
        start = (i * in_size) // out_size
        end = -(-((i + 1) * in_size) // out_size)  # ceil
        P[i, start:end] = 1.0 / float(end - start)
    return P


def upsample_matrix(out_size, in_size):
    """(out_size, in_size) bilinear interpolation matrix, align_corners=True."""
    U = np.zeros((out_size, in_size), np.float32)
    if in_size == 1:
        U[:, 0] = 1.0
    else:
        for i in range(out_size):
            src = 0.0 if out_size == 1 else i * (in_size - 1) / (out_size - 1)
            lo = int(np.floor(src))
            hi = min(lo + 1, in_size - 1)
            frac = src - lo
            U[i, lo] += 1.0 - frac
            U[i, hi] += frac
    return U


def build_packed_spatial_ops(H, W, pool_sizes=POOL_SIZES):
    """Per-sample pool / upsample operators for all stages, packed.

    Returns PT_all:(H*W, S_total), UT_all:(S_total, H*W) and the static
    per-stage column/row offsets (each stage's pooled axis padded to a
    multiple of 8 so in-kernel slices are sublane-aligned).
    """
    pts, uts, s_off = [], [], [0]
    for s in pool_sizes:
        Ph = adaptive_pool_matrix(H, s)            # (s, H)
        Pw = adaptive_pool_matrix(W, s)            # (s, W)
        Uh = upsample_matrix(H, s)                 # (H, s)
        Uw = upsample_matrix(W, s)                 # (W, s)
        PT = np.kron(Ph, Pw).T                     # (H*W, s*s)  pool operator
        UT = np.kron(Uh, Uw).T                     # (s*s, H*W)  upsample operator
        S = s * s
        S_pad = -(-S // 8) * 8
        if S_pad != S:
            PT = np.pad(PT, ((0, 0), (0, S_pad - S)))
            UT = np.pad(UT, ((0, S_pad - S), (0, 0)))
        pts.append(PT)
        uts.append(UT)
        s_off.append(s_off[-1] + S_pad)
    PT_all = jnp.asarray(np.concatenate(pts, axis=1))   # (H*W, S_total)
    UT_all = jnp.asarray(np.concatenate(uts, axis=0))   # (S_total, H*W)
    return PT_all, UT_all, tuple(s_off)


# ----------------------------------------------------------------------------
# Pallas kernel: one grid step per batch element, everything else resident
# ----------------------------------------------------------------------------
def make_pyramid_kernel(s_off, b_off, inter):
    n_stages = len(s_off) - 1

    def kernel(x_ref, pt_ref, ut_ref, wb_ref, wp_ref, bb_ref, o_ref):
        x = x_ref[...]                                           # (Cin, HW)
        # Hoisted base 1x1 convs: all four stages consume the ORIGINAL x,
        # so one stacked matmul replaces four dependent ones.
        y_all = jnp.dot(wb_ref[...], x,
                        preferred_element_type=jnp.float32)      # (sumCout, HW)

        feat = x
        for i in range(n_stages):
            s0, s1 = s_off[i], s_off[i + 1]
            c0, c1 = b_off[i], b_off[i + 1]
            w0 = i * inter
            # upsample(BN(conv1x1(adaptive_avg_pool(feat)))) as 3 matmuls.
            # The pooled-path bias has been folded into bb downstream
            # (align_corners bilinear weights sum to 1 per output pixel).
            pooled = jnp.dot(feat, pt_ref[:, s0:s1],
                             preferred_element_type=jnp.float32)         # (C, S_i)
            conv = jnp.dot(wp_ref[w0:w0 + inter, :], pooled,
                           preferred_element_type=jnp.float32)           # (C, S_i)
            branch = jnp.dot(conv, ut_ref[s0:s1, :],
                             preferred_element_type=jnp.float32)         # (C, HW)
            feat = jnp.maximum(y_all[c0:c1, :] + bb_ref[c0:c1, :] + branch, 0.0)

        o_ref[...] = feat.astype(o_ref.dtype)

    return kernel


def pyramid_pool_add_forward_pallas(x, PT_all, UT_all, WB, WP, BB,
                                    s_off, b_off, inter):
    """x: (N, Cin, H, W) float32. Returns (N, Cout, H, W)."""
    N, cin, H, W = x.shape
    HW = H * W
    cout = b_off[-1] - b_off[-2]

    x3 = x.reshape(N, cin, HW)        # batch-major; last axis (h*W+w) on lanes

    kernel = make_pyramid_kernel(s_off, b_off, inter)

    out = pl.pallas_call(
        kernel,
        out_shape=jax.ShapeDtypeStruct((N, cout, HW), jnp.float32),
        grid=(N,),
        in_specs=[
            # Per-sample activation slab; batch dim squeezed out of the view.
            pl.BlockSpec((pl.Squeezed(), cin, HW), lambda n: (n, 0, 0)),
            # Packed operators / weights: same block every step -> resident.
            pl.BlockSpec(PT_all.shape, lambda n: (0, 0)),
            pl.BlockSpec(UT_all.shape, lambda n: (0, 0)),
            pl.BlockSpec(WB.shape, lambda n: (0, 0)),
            pl.BlockSpec(WP.shape, lambda n: (0, 0)),
            pl.BlockSpec(BB.shape, lambda n: (0, 0)),
        ],
        out_specs=pl.BlockSpec((pl.Squeezed(), cout, HW), lambda n: (n, 0, 0)),
        compiler_params=pltpu.CompilerParams(
            dimension_semantics=("parallel",)),   # batch sharded across TCs (v7x)
    )(x3, PT_all, UT_all, WB, WP, BB)

    return out.reshape(N, cout, H, W)


# ----------------------------------------------------------------------------
# Parameter construction / preparation (outside jit)
# ----------------------------------------------------------------------------
def make_params(key, in_channels, out_channels):
    inter = in_channels
    eps = 1e-5
    params = {}
    keys = jax.random.split(key, 32)
    k_iter = iter(keys)

    def conv_bn(cout, cin):
        w = 0.3 * jax.random.normal(next(k_iter), (cout, cin), jnp.float32)
        b = 0.1 * jax.random.normal(next(k_iter), (cout,), jnp.float32)
        gamma = 1.0 + 0.1 * jax.random.normal(next(k_iter), (cout,), jnp.float32)
        beta = 0.1 * jax.random.normal(next(k_iter), (cout,), jnp.float32)
        r_mean = 0.05 * jax.random.normal(next(k_iter), (cout,), jnp.float32)
        r_var = 1.0 + 0.1 * jnp.abs(jax.random.normal(next(k_iter), (cout,), jnp.float32))
        scale = gamma / jnp.sqrt(r_var + eps)
        shift = beta - r_mean * scale
        return (w, b, scale, shift)

    def conv(cout, cin):
        w = 0.3 * jax.random.normal(next(k_iter), (cout, cin), jnp.float32)
        b = 0.1 * jax.random.normal(next(k_iter), (cout,), jnp.float32)
        return (w, b)

    params['conv1'] = conv_bn(inter, in_channels)
    params['conv_branch2'] = conv(inter, in_channels)
    params['conv2'] = conv_bn(inter, in_channels)
    params['conv_branch3'] = conv(inter, in_channels)
    params['conv3'] = conv_bn(inter, in_channels)
    params['conv_branch4'] = conv(inter, in_channels)
    params['conv4'] = conv_bn(inter, in_channels)
    params['conv_branch5'] = conv(out_channels, in_channels)
    return params


def prepare_packed_params(params):
    """Fold eval-mode BN into the pooled-path 1x1 convs, fold their biases
    into the downstream branch-conv biases, and stack everything into three
    packed arrays (WP, WB, BB)."""
    wps, bps = [], []
    for name in ('conv1', 'conv2', 'conv3', 'conv4'):
        w, b, scale, shift = params[name]
        wps.append(scale[:, None] * w)
        bps.append(scale * b + shift)

    wbs, bbs, b_off = [], [], [0]
    for name, bp in zip(('conv_branch2', 'conv_branch3', 'conv_branch4',
                         'conv_branch5'), bps):
        w, b = params[name]
        wbs.append(w)
        bbs.append(b + bp)      # pooled-path bias passes through the upsample
        b_off.append(b_off[-1] + w.shape[0])

    WP = jnp.concatenate(wps, axis=0)             # (4*inter, Cin)
    WB = jnp.concatenate(wbs, axis=0)             # (3*inter + Cout, Cin)
    BB = jnp.concatenate(bbs, axis=0)[:, None]    # (3*inter + Cout, 1)
    return WP, WB, BB, tuple(b_off)


# ----------------------------------------------------------------------------
# Pure-JAX reference (mirrors the PyTorch forward, unfused, NCHW)
# ----------------------------------------------------------------------------
def pyramid_pool_add_forward_ref(x, params):
    N, cin, H, W = x.shape
    HI = jax.lax.Precision.HIGHEST

    def conv1x1(w, b, feat):
        return jnp.einsum('nchw,dc->ndhw', feat, w, precision=HI) + b[None, :, None, None]

    def pooled_branch(feat, s, w, b, scale, shift):
        Ph = jnp.asarray(adaptive_pool_matrix(H, s))
        Pw = jnp.asarray(adaptive_pool_matrix(W, s))
        Uh = jnp.asarray(upsample_matrix(H, s))
        Uw = jnp.asarray(upsample_matrix(W, s))
        pooled = jnp.einsum('oh,nchw,pw->ncop', Ph, feat, Pw, precision=HI)
        y = conv1x1(w, b, pooled)
        y = y * scale[None, :, None, None] + shift[None, :, None, None]
        return jnp.einsum('Hs,ncst,Wt->ncHW', Uh, y, Uw, precision=HI)

    b1 = pooled_branch(x, 6, *params['conv1'])
    x2 = jnp.maximum(conv1x1(*params['conv_branch2'], x) + b1, 0.0)
    b2 = pooled_branch(x2, 3, *params['conv2'])
    x3 = jnp.maximum(conv1x1(*params['conv_branch3'], x) + b2, 0.0)
    b3 = pooled_branch(x3, 2, *params['conv3'])
    x4 = jnp.maximum(conv1x1(*params['conv_branch4'], x) + b3, 0.0)
    b4 = pooled_branch(x4, 1, *params['conv4'])
    return jnp.maximum(conv1x1(*params['conv_branch5'], x) + b4, 0.0)


# ----------------------------------------------------------------------------
if __name__ == "__main__":
    N, C_IN, C_OUT, H, W = 2, 8, 8, 16, 16

    key = jax.random.PRNGKey(0)
    k_x, k_p = jax.random.split(key)
    x = jax.random.normal(k_x, (N, C_IN, H, W), jnp.float32)
    params = make_params(k_p, C_IN, C_OUT)

    WP, WB, BB, b_off = prepare_packed_params(params)
    PT_all, UT_all, s_off = build_packed_spatial_ops(H, W)
    inter = C_IN

    fwd = jax.jit(lambda xx, pt, ut, wb, wp, bb: pyramid_pool_add_forward_pallas(
        xx, pt, ut, wb, wp, bb, s_off, b_off, inter))
    out = jax.block_until_ready(fwd(x, PT_all, UT_all, WB, WP, BB))

    ref = jax.block_until_ready(pyramid_pool_add_forward_ref(x, params))

    assert out.shape == (N, C_OUT, H, W), out.shape
    np.testing.assert_allclose(np.asarray(out), np.asarray(ref), rtol=1e-3, atol=1e-3)
    print("KERNEL_OK")
</pallas_src>

<mosaic_0001>
module attributes {stable_mosaic.version = 11 : i64} {
  func.func @kernel(%arg0: i32, %arg1: memref<1x8x256xf32, #tpu.memory_space<vmem>>, %arg2: memref<256x72xf32, #tpu.memory_space<vmem>>, %arg3: memref<72x256xf32, #tpu.memory_space<vmem>>, %arg4: memref<32x8xf32, #tpu.memory_space<vmem>>, %arg5: memref<32x8xf32, #tpu.memory_space<vmem>>, %arg6: memref<32x1xf32, #tpu.memory_space<vmem>>, %arg7: memref<1x8x256xf32, #tpu.memory_space<vmem>>) attributes {dimension_semantics = [#tpu.dimension_semantics<parallel>], iteration_bounds = array<i64: 2>, scalar_prefetch = 0 : i64, scratch_operands = 0 : i64, tpu.core_type = #tpu.core_type<tc>, window_params = [{transform_indices = @transform_0, window_bounds = array<i64: 1, 8, 256>}, {pipeline_mode = #tpu.pipeline_mode<synchronous>, transform_indices = @transform_1, window_bounds = array<i64: 256, 72>}, {pipeline_mode = #tpu.pipeline_mode<synchronous>, transform_indices = @transform_2, window_bounds = array<i64: 72, 256>}, {pipeline_mode = #tpu.pipeline_mode<synchronous>, transform_indices = @transform_3, window_bounds = array<i64: 32, 8>}, {pipeline_mode = #tpu.pipeline_mode<synchronous>, transform_indices = @transform_4, window_bounds = array<i64: 32, 8>}, {pipeline_mode = #tpu.pipeline_mode<synchronous>, transform_indices = @transform_5, window_bounds = array<i64: 32, 1>}, {transform_indices = @transform_6, window_bounds = array<i64: 1, 8, 256>}]} {
    %c0 = arith.constant 0 : index
    %c0_0 = arith.constant 0 : index
    %c0_1 = arith.constant 0 : index
    %0 = vector.load %arg1[%c0, %c0_0, %c0_1] : memref<1x8x256xf32, #tpu.memory_space<vmem>>, vector<1x8x256xf32>
    %1 = vector.shape_cast %0 : vector<1x8x256xf32> to vector<8x256xf32>
    %c0_2 = arith.constant 0 : index
    %c0_3 = arith.constant 0 : index
    %2 = vector.load %arg4[%c0_2, %c0_3] : memref<32x8xf32, #tpu.memory_space<vmem>>, vector<32x8xf32>
    %cst = arith.constant dense<0.000000e+00> : vector<32x256xf32>
    %3 = tpu.matmul %2, %1, %cst {dimension_numbers = #tpu.dot_dimension_numbers<[1], [0], [0], [1], [0, 0, 1, 1], [], []>} : vector<32x8xf32>, vector<8x256xf32>, vector<32x256xf32> -> vector<32x256xf32>
    %c0_4 = arith.constant 0 : index
    %c0_5 = arith.constant 0 : index
    %4 = vector.load %arg2[%c0_4, %c0_5] : memref<256x72xf32, #tpu.memory_space<vmem>>, vector<256x40xf32>
    %cst_6 = arith.constant dense<0.000000e+00> : vector<8x40xf32>
    %5 = tpu.matmul %1, %4, %cst_6 {dimension_numbers = #tpu.dot_dimension_numbers<[1], [0], [0], [1], [0, 0, 1, 1], [], []>} : vector<8x256xf32>, vector<256x40xf32>, vector<8x40xf32> -> vector<8x40xf32>
    %c0_7 = arith.constant 0 : index
    %c0_8 = arith.constant 0 : index
    %6 = vector.load %arg5[%c0_7, %c0_8] : memref<32x8xf32, #tpu.memory_space<vmem>>, vector<8x8xf32>
    %cst_9 = arith.constant dense<0.000000e+00> : vector<8x40xf32>
    %7 = tpu.matmul %6, %5, %cst_9 {dimension_numbers = #tpu.dot_dimension_numbers<[1], [0], [0], [1], [0, 0, 1, 1], [], []>} : vector<8x8xf32>, vector<8x40xf32>, vector<8x40xf32> -> vector<8x40xf32>
    %c0_10 = arith.constant 0 : index
    %c0_11 = arith.constant 0 : index
    %8 = vector.load %arg3[%c0_10, %c0_11] : memref<72x256xf32, #tpu.memory_space<vmem>>, vector<40x256xf32>
    %cst_12 = arith.constant dense<0.000000e+00> : vector<8x256xf32>
    %9 = tpu.matmul %7, %8, %cst_12 {dimension_numbers = #tpu.dot_dimension_numbers<[1], [0], [0], [1], [0, 0, 1, 1], [], []>} : vector<8x40xf32>, vector<40x256xf32>, vector<8x256xf32> -> vector<8x256xf32>
    %10 = vector.extract_strided_slice %3 {offsets = [0, 0], sizes = [8, 256], strides = [1, 1]} : vector<32x256xf32> to vector<8x256xf32>
    %c0_13 = arith.constant 0 : index
    %c0_14 = arith.constant 0 : index
    %11 = vector.load %arg6[%c0_13, %c0_14] : memref<32x1xf32, #tpu.memory_space<vmem>>, vector<8x1xf32>
    %12 = vector.broadcast %11 : vector<8x1xf32> to vector<8x256xf32>
    %13 = arith.addf %10, %12 : vector<8x256xf32>
    %14 = arith.addf %13, %9 : vector<8x256xf32>
    %cst_15 = arith.constant 0.000000e+00 : f32
    %15 = vector.broadcast %cst_15 : f32 to vector<8x256xf32>
    %16 = arith.maximumf %14, %15 : vector<8x256xf32>
    %c0_16 = arith.constant 0 : index
    %c40 = arith.constant 40 : index
    %17 = vector.load %arg2[%c0_16, %c40] : memref<256x72xf32, #tpu.memory_space<vmem>>, vector<256x16xf32>
    %cst_17 = arith.constant dense<0.000000e+00> : vector<8x16xf32>
    %18 = tpu.matmul %16, %17, %cst_17 {dimension_numbers = #tpu.dot_dimension_numbers<[1], [0], [0], [1], [0, 0, 1, 1], [], []>} : vector<8x256xf32>, vector<256x16xf32>, vector<8x16xf32> -> vector<8x16xf32>
    %c8 = arith.constant 8 : index
    %c0_18 = arith.constant 0 : index
    %19 = vector.load %arg5[%c8, %c0_18] : memref<32x8xf32, #tpu.memory_space<vmem>>, vector<8x8xf32>
    %cst_19 = arith.constant dense<0.000000e+00> : vector<8x16xf32>
    %20 = tpu.matmul %19, %18, %cst_19 {dimension_numbers = #tpu.dot_dimension_numbers<[1], [0], [0], [1], [0, 0, 1, 1], [], []>} : vector<8x8xf32>, vector<8x16xf32>, vector<8x16xf32> -> vector<8x16xf32>
    %c40_20 = arith.constant 40 : index
    %c0_21 = arith.constant 0 : index
    %21 = vector.load %arg3[%c40_20, %c0_21] : memref<72x256xf32, #tpu.memory_space<vmem>>, vector<16x256xf32>
    %cst_22 = arith.constant dense<0.000000e+00> : vector<8x256xf32>
    %22 = tpu.matmul %20, %21, %cst_22 {dimension_numbers = #tpu.dot_dimension_numbers<[1], [0], [0], [1], [0, 0, 1, 1], [], []>} : vector<8x16xf32>, vector<16x256xf32>, vector<8x256xf32> -> vector<8x256xf32>
    %23 = vector.extract_strided_slice %3 {offsets = [8, 0], sizes = [8, 256], strides = [1, 1]} : vector<32x256xf32> to vector<8x256xf32>
    %c8_23 = arith.constant 8 : index
    %c0_24 = arith.constant 0 : index
    %24 = vector.load %arg6[%c8_23, %c0_24] : memref<32x1xf32, #tpu.memory_space<vmem>>, vector<8x1xf32>
    %25 = vector.broadcast %24 : vector<8x1xf32> to vector<8x256xf32>
    %26 = arith.addf %23, %25 : vector<8x256xf32>
    %27 = arith.addf %26, %22 : vector<8x256xf32>
    %cst_25 = arith.constant 0.000000e+00 : f32
    %28 = vector.broadcast %cst_25 : f32 to vector<8x256xf32>
    %29 = arith.maximumf %27, %28 : vector<8x256xf32>
    %c0_26 = arith.constant 0 : index
    %c56 = arith.constant 56 : index
    %30 = vector.load %arg2[%c0_26, %c56] : memref<256x72xf32, #tpu.memory_space<vmem>>, vector<256x8xf32>
    %cst_27 = arith.constant dense<0.000000e+00> : vector<8x8xf32>
    %31 = tpu.matmul %29, %30, %cst_27 {dimension_numbers = #tpu.dot_dimension_numbers<[1], [0], [0], [1], [0, 0, 1, 1], [], []>} : vector<8x256xf32>, vector<256x8xf32>, vector<8x8xf32> -> vector<8x8xf32>
    %c16 = arith.constant 16 : index
    %c0_28 = arith.constant 0 : index
    %32 = vector.load %arg5[%c16, %c0_28] : memref<32x8xf32, #tpu.memory_space<vmem>>, vector<8x8xf32>
    %cst_29 = arith.constant dense<0.000000e+00> : vector<8x8xf32>
    %33 = tpu.matmul %32, %31, %cst_29 {dimension_numbers = #tpu.dot_dimension_numbers<[1], [0], [0], [1], [0, 0, 1, 1], [], []>} : vector<8x8xf32>, vector<8x8xf32>, vector<8x8xf32> -> vector<8x8xf32>
    %c56_30 = arith.constant 56 : index
    %c0_31 = arith.constant 0 : index
    %34 = vector.load %arg3[%c56_30, %c0_31] : memref<72x256xf32, #tpu.memory_space<vmem>>, vector<8x256xf32>
    %cst_32 = arith.constant dense<0.000000e+00> : vector<8x256xf32>
    %35 = tpu.matmul %33, %34, %cst_32 {dimension_numbers = #tpu.dot_dimension_numbers<[1], [0], [0], [1], [0, 0, 1, 1], [], []>} : vector<8x8xf32>, vector<8x256xf32>, vector<8x256xf32> -> vector<8x256xf32>
    %36 = vector.extract_strided_slice %3 {offsets = [16, 0], sizes = [8, 256], strides = [1, 1]} : vector<32x256xf32> to vector<8x256xf32>
    %c16_33 = arith.constant 16 : index
    %c0_34 = arith.constant 0 : index
    %37 = vector.load %arg6[%c16_33, %c0_34] : memref<32x1xf32, #tpu.memory_space<vmem>>, vector<8x1xf32>
    %38 = vector.broadcast %37 : vector<8x1xf32> to vector<8x256xf32>
    %39 = arith.addf %36, %38 : vector<8x256xf32>
    %40 = arith.addf %39, %35 : vector<8x256xf32>
    %cst_35 = arith.constant 0.000000e+00 : f32
    %41 = vector.broadcast %cst_35 : f32 to vector<8x256xf32>
    %42 = arith.maximumf %40, %41 : vector<8x256xf32>
    %c0_36 = arith.constant 0 : index
    %c64 = arith.constant 64 : index
    %43 = vector.load %arg2[%c0_36, %c64] : memref<256x72xf32, #tpu.memory_space<vmem>>, vector<256x8xf32>
    %cst_37 = arith.constant dense<0.000000e+00> : vector<8x8xf32>
    %44 = tpu.matmul %42, %43, %cst_37 {dimension_numbers = #tpu.dot_dimension_numbers<[1], [0], [0], [1], [0, 0, 1, 1], [], []>} : vector<8x256xf32>, vector<256x8xf32>, vector<8x8xf32> -> vector<8x8xf32>
    %c24 = arith.constant 24 : index
    %c0_38 = arith.constant 0 : index
    %45 = vector.load %arg5[%c24, %c0_38] : memref<32x8xf32, #tpu.memory_space<vmem>>, vector<8x8xf32>
    %cst_39 = arith.constant dense<0.000000e+00> : vector<8x8xf32>
    %46 = tpu.matmul %45, %44, %cst_39 {dimension_numbers = #tpu.dot_dimension_numbers<[1], [0], [0], [1], [0, 0, 1, 1], [], []>} : vector<8x8xf32>, vector<8x8xf32>, vector<8x8xf32> -> vector<8x8xf32>
    %c64_40 = arith.constant 64 : index
    %c0_41 = arith.constant 0 : index
    %47 = vector.load %arg3[%c64_40, %c0_41] : memref<72x256xf32, #tpu.memory_space<vmem>>, vector<8x256xf32>
    %cst_42 = arith.constant dense<0.000000e+00> : vector<8x256xf32>
    %48 = tpu.matmul %46, %47, %cst_42 {dimension_numbers = #tpu.dot_dimension_numbers<[1], [0], [0], [1], [0, 0, 1, 1], [], []>} : vector<8x8xf32>, vector<8x256xf32>, vector<8x256xf32> -> vector<8x256xf32>
    %49 = vector.extract_strided_slice %3 {offsets = [24, 0], sizes = [8, 256], strides = [1, 1]} : vector<32x256xf32> to vector<8x256xf32>
    %c24_43 = arith.constant 24 : index
    %c0_44 = arith.constant 0 : index
    %50 = vector.load %arg6[%c24_43, %c0_44] : memref<32x1xf32, #tpu.memory_space<vmem>>, vector<8x1xf32>
    %51 = vector.broadcast %50 : vector<8x1xf32> to vector<8x256xf32>
    %52 = arith.addf %49, %51 : vector<8x256xf32>
    %53 = arith.addf %52, %48 : vector<8x256xf32>
    %cst_45 = arith.constant 0.000000e+00 : f32
    %54 = vector.broadcast %cst_45 : f32 to vector<8x256xf32>
    %55 = arith.maximumf %53, %54 : vector<8x256xf32>
    %c0_46 = arith.constant 0 : index
    %c0_47 = arith.constant 0 : index
    %c0_48 = arith.constant 0 : index
    %56 = vector.load %arg7[%c0_46, %c0_47, %c0_48] : memref<1x8x256xf32, #tpu.memory_space<vmem>>, vector<1x8x256xf32>
    %57 = vector.shape_cast %56 : vector<1x8x256xf32> to vector<8x256xf32>
    %58 = vector.shape_cast %55 : vector<8x256xf32> to vector<1x8x256xf32>
    tpu.vector_store %arg7[%c0_46, %c0_47, %c0_48], %58 {strides = array<i32>} : memref<1x8x256xf32, #tpu.memory_space<vmem>>, vector<1x8x256xf32>,
    return
  }
  func.func @transform_0(%arg0: i32) -> (i32, i32, i32) {
    %c0_i32 = arith.constant 0 : i32
    %c0_i32_0 = arith.constant 0 : i32
    %c0_i32_1 = arith.constant 0 : i32
    return %arg0, %c0_i32, %c0_i32_0 : i32, i32, i32
  }
  func.func @transform_1(%arg0: i32) -> (i32, i32) {
    %c0_i32 = arith.constant 0 : i32
    %c0_i32_0 = arith.constant 0 : i32
    %c0_i32_1 = arith.constant 0 : i32
    return %c0_i32, %c0_i32_0 : i32, i32
  }
  func.func @transform_2(%arg0: i32) -> (i32, i32) {
    %c0_i32 = arith.constant 0 : i32
    %c0_i32_0 = arith.constant 0 : i32
    %c0_i32_1 = arith.constant 0 : i32
    return %c0_i32, %c0_i32_0 : i32, i32
  }
  func.func @transform_3(%arg0: i32) -> (i32, i32) {
    %c0_i32 = arith.constant 0 : i32
    %c0_i32_0 = arith.constant 0 : i32
    %c0_i32_1 = arith.constant 0 : i32
    return %c0_i32, %c0_i32_0 : i32, i32
  }
  func.func @transform_4(%arg0: i32) -> (i32, i32) {
    %c0_i32 = arith.constant 0 : i32
    %c0_i32_0 = arith.constant 0 : i32
    %c0_i32_1 = arith.constant 0 : i32
    return %c0_i32, %c0_i32_0 : i32, i32
  }
  func.func @transform_5(%arg0: i32) -> (i32, i32) {
    %c0_i32 = arith.constant 0 : i32
    %c0_i32_0 = arith.constant 0 : i32
    %c0_i32_1 = arith.constant 0 : i32
    return %c0_i32, %c0_i32_0 : i32, i32
  }
  func.func @transform_6(%arg0: i32) -> (i32, i32, i32) {
    %c0_i32 = arith.constant 0 : i32
    %c0_i32_0 = arith.constant 0 : i32
    %c0_i32_1 = arith.constant 0 : i32
    return %arg0, %c0_i32, %c0_i32_0 : i32, i32, i32
  }
}

</mosaic_0001>

<bundles_post_ra>
// kernel: _lambda_.1
= control target key start
LH: loop header
LB: loop body
LE: loop exit
PB: predicated region body
PF: predicated region fallthrough
CT: control target
= control target key end

     0   :  { %s2363_s21 = smov 0   ;;  %s2855_s0 = inlined_call_operand.vmem [shape: f32[2,8,256], index: 0, kind: input, shape index: {}]   ;;  %s2856_s1 = inlined_call_operand.vmem [shape: f32[256,72], index: 1, kind: input, shape index: {}]   ;;  %s2857_s2 = inlined_call_operand.vmem [shape: f32[72,256], index: 2, kind: input, shape index: {}]   ;;  %s2858_s3 = inlined_call_operand.vmem [shape: f32[32,8], index: 3, kind: input, shape index: {}]   ;;  %s2859_s4 = inlined_call_operand.vmem [shape: f32[32,8], index: 4, kind: input, shape index: {}]   ;;  %s2860_s5 = inlined_call_operand.vmem [shape: f32[32,1], index: 5, kind: input, shape index: {}]   ;;  %s2861_s6 = inlined_call_operand.vmem [shape: f32[2,8,256], index: 6, kind: output, shape index: {}]  }
   0x1 LB: > { %s1709_s22 = sadd.s32 4294967295, %s2320_s21   ;;  %p1713_p0 = scmp.ge.s32.totalorder %s2320_s21, 1  ;;  %s2320_s21 = sphi %s2363_s21, %s16_s21  }
   0x2   : > { %p212_p1 = scmp.lt.s32.totalorder %s2320_s21, 3 }
   0x4   : > { %p213_p2 = pnand %p1713_p0, %p212_p1 }
   0x5   : > { %v2374_v0 = vld [vmem:[%s2856_s1 + $0x80] sm:$0xff] (!%p213_p2)  ;;  %v2379_v1 = vld [vmem:[%s2856_s1 + $0x88] sm:$0xff] (!%p213_p2)  ;;  %p242_p3 = scmp.lt.s32.totalorder (!%p213_p2), %s1709_s22, 1  ;;  %v2396_v5 = vld [vmem:[%s2856_s1 + $0x90] sm:$0xff] (!%p213_p2)  ;;  %v2322_v7 = vmov (!%p213_p2), 0.0   ;;  %vm258_vm0 = vcmask (!%p213_p2), 64512  }
   0x6   : > { %216 = sbr.rel (%p213_p2) target bundleno = 2625 (0xa41), region = 44  ;;  %v2384_v2 = vld [vmem:[%s2856_s1] sm:$0xff] (!%p213_p2)  ;;  %v1902_v3 = vpack.c.bf16 (!%p213_p2), %v2379_v1, %v2374_v0  ;;  %v2391_v4 = vld [vmem:[%s2856_s1 + $0x8] sm:$0xff] (!%p213_p2)  ;;  %v2401_v6 = vld [vmem:[%s2856_s1 + $0x98] sm:$0xff] (!%p213_p2)  ;;  %335 = vmatprep.mubr.f32.mxu0 (!%p213_p2), %v2322_v7  ;;  %vm2323_vm1 = vmmov (!%p213_p2), 0   ;;  %v2590_v55 = vpack.i.bf16 (!%p213_p2), %v2379_v1, %v2374_v0  ;;  %s2324_s11 = smov (!%p213_p2), 88  }
   0x7   : > { %v1904_v8 = vpack.c.bf16 (!%p213_p2), %v2391_v4, %v2384_v2  ;;  %v1906_v9 = vpack.c.bf16 (!%p213_p2), %v2401_v6, %v2396_v5  ;;  %v2411_v10 = vld [vmem:[%s2856_s1 + $0x10] sm:$0xff] (!%p213_p2)  ;;  %v2416_v11 = vld [vmem:[%s2856_s1 + $0x18] sm:$0xff] (!%p213_p2)  ;;  %v2421_v12 = vld [vmem:[%s2856_s1 + $0xa0] sm:$0xff] (!%p213_p2)  ;;  %v2596_v56 = vpack.i.bf16 (!%p213_p2), %v2391_v4, %v2384_v2  ;;  %s2326_s16 = smov (!%p213_p2), 72   ;;  %s2327_s20 = smov (!%p213_p2), 64   ;;  %vm546_vm2 = vcmask (!%p213_p2), 326656  }
   0x8   : > { %1903 = vmatprep.subr.bf16.mxu1 (!%p213_p2), %v1902_v3  ;;  %v2428_v13 = vld [vmem:[%s2856_s1 + $0xa8] sm:$0xff] (!%p213_p2)  ;;  %v1908_v14 = vpack.c.bf16 (!%p213_p2), %v2416_v11, %v2411_v10  ;;  %v2438_v16 = vld [vmem:[%s2856_s1 + $0x20] sm:$0xff] (!%p213_p2)  ;;  %v2448_v18 = vld [vmem:[%s2856_s1 + $0xb0] sm:$0xff] (!%p213_p2)  ;;  %2073 = vrot.lane.b32.xlu0 (!%p213_p2), %v2590_v55, %s2324_s11  ;;  %vm909_vm3 = vcmask (!%p213_p2), 130048  }
   0x9   : > { %1905 = vmatpush3.bf16.msra.mxu1 (!%p213_p2), %v1904_v8  ;;  %v1910_v15 = vpack.c.bf16 (!%p213_p2), %v2428_v13, %v2421_v12  ;;  %v2443_v17 = vld [vmem:[%s2856_s1 + $0x28] sm:$0xff] (!%p213_p2)  ;;  %v2453_v19 = vld [vmem:[%s2856_s1 + $0xb8] sm:$0xff] (!%p213_p2)  ;;  %v2467_v22 = vld [vmem:[%s2856_s1 + $0x30] sm:$0xff] (!%p213_p2)  ;;  %v2602_v57 = vpack.i.bf16 (!%p213_p2), %v2428_v13, %v2421_v12 }
   0xa   : > { %1907 = vmatprep.subr.bf16.mxu1 (!%p213_p2), %v1906_v9  ;;  %v1912_v20 = vpack.c.bf16 (!%p213_p2), %v2443_v17, %v2438_v16  ;;  %v1914_v21 = vpack.c.bf16 (!%p213_p2), %v2453_v19, %v2448_v18  ;;  %v2472_v23 = vld [vmem:[%s2856_s1 + $0x38] sm:$0xff] (!%p213_p2)  ;;  %v2477_v24 = vld [vmem:[%s2856_s1 + $0xc0] sm:$0xff] (!%p213_p2)  ;;  %v2482_v25 = vld [vmem:[%s2856_s1 + $0xc8] sm:$0xff] (!%p213_p2) }
   0xb   : > { %v254_v28 = vld [vmem:[%s2858_s3] sm:$0xff] (!%p213_p2)  ;;  %v1916_v29 = vpack.c.bf16 (!%p213_p2), %v2472_v23, %v2467_v22  ;;  %v1918_v30 = vpack.c.bf16 (!%p213_p2), %v2482_v25, %v2477_v24  ;;  %v2499_v32 = vld [vmem:[%s2856_s1 + $0x48] sm:$0xff] (!%p213_p2)  ;;  %v2505_v33 = vld [vmem:[%s2856_s1 + $0xd0] sm:$0xff] (!%p213_p2) }
   0xc   : > { %v2494_v31 = vld [vmem:[%s2856_s1 + $0x40] sm:$0xff] (!%p213_p2)  ;;  %v2510_v34 = vld [vmem:[%s2856_s1 + $0xd8] sm:$0xff] (!%p213_p2)  ;;  %v255_v35 = vld [vmem:[%s2858_s3 + $0x8] sm:$0xff] (!%p213_p2)  ;;  %2078 = vrot.lane.b32.xlu0 (!%p213_p2), %v2596_v56, %s2324_s11 }
   0xd   : > { %s2863_s22 = smov (!%p242_p3, %s1709_s22), 1  ;;  %1909 = vmatpush3.bf16.msra.mxu1 %v1908_v14  ;;  %v1920_v36 = vpack.c.bf16 %v2499_v32, %v2494_v31  ;;  %v1922_v37 = vpack.c.bf16 %v2510_v34, %v2505_v33  ;;  %v2524_v38 = vld [vmem:[%s2856_s1 + $0x50] sm:$0xff]  ;;  %v2529_v39 = vld [vmem:[%s2856_s1 + $0x58] sm:$0xff]  ;;  %v2535_v40 = vld [vmem:[%s2856_s1 + $0xe0] sm:$0xff] }
   0xe   : > { %s1732_s19 = sshll.u32 %s2863_s22, 4  ;;  %1911 = vmatprep.subr.bf16.mxu1 %v1910_v15  ;;  %v2540_v41 = vld [vmem:[%s2856_s1 + $0xe8] sm:$0xff]  ;;  %v256_v42 = vld [vmem:[%s2858_s3 + $0x10] sm:$0xff]  ;;  %v1924_v43 = vpack.c.bf16 %v2529_v39, %v2524_v38  ;;  %v2553_v45 = vld [vmem:[%s2856_s1 + $0x60] sm:$0xff] }
   0xf   : > { %s246_s8 = scalar_lea.vmem %s2855_s0, %s1732_s19  ;;  %v1926_v44 = vpack.c.bf16 %v2540_v41, %v2535_v40  ;;  %v2558_v46 = vld [vmem:[%s2856_s1 + $0x68] sm:$0xff]  ;;  %v390_v47 = vld [vmem:[%s2856_s1 + $0xf0] sm:$0xff]  ;;  %v391_v48 = vld [vmem:[%s2856_s1 + $0xf8] sm:$0xff]  ;;  %s251_s29 = scalar_lea.vmem %s2861_s6, %s1732_s19 }
  0x10   : > { %v253_v26 = vld [vmem:[%s246_s8 + $0x8] sm:$0xff]  ;;  %v252_v27 = vld [vmem:[%s246_s8] sm:$0xff]  ;;  %v1928_v49 = vpack.c.bf16 %v2558_v46, %v2553_v45  ;;  %v1930_v50 = vpack.c.bf16 %v391_v48, %v390_v47  ;;  %v2573_v51 = vld [vmem:[%s2856_s1 + $0x70] sm:$0xff]  ;;  %2093 = vrot.lane.b32.xlu0 %v2602_v57, %s2324_s11 }
  0x11   : > { %456 = vmatprep.mubr.f32.mxu1 %v253_v26  ;;  %271 = vmatprep.subr.mxu0 %v253_v26  ;;  %v2578_v52 = vld [vmem:[%s2856_s1 + $0x78] sm:$0xff]  ;;  %v537_v58 = vld [vmem:[%s2857_s2 + $0x8] sm:$0xff]  ;;  %v536_v60 = vld [vmem:[%s2857_s2] sm:$0xff]  ;;  %v2652_v26 = vpack.i.bf16 %v2510_v34, %v2505_v33 }
  0x12   : > { %1913 = vmatpush3.bf16.msra.mxu1 %v1912_v20  ;;  %272 = vmatpush1.msra.mxu0 %v252_v27  ;;  %v1932_v53 = vpack.c.bf16 %v2578_v52, %v2573_v51  ;;  %v257_v54 = vld [vmem:[%s2858_s3 + $0x18] sm:$0xff]  ;;  %v538_v61 = vld [vmem:[%s2857_s2 + $0x10] sm:$0xff]  ;;  %v541_v63 = vld [vmem:[%s2857_s2 + $0x28] sm:$0xff]  ;;  %v2640_v20 = vpack.i.bf16 %v2453_v19, %v2448_v18  ;;  %v2325_v19 = vmov 0  }
  0x13   : > { %1915 = vmatprep.subr.bf16.mxu1 %v1914_v21  ;;  %1718 = vmatmul.mubr.msk.f32.vlgmr.msra.gmra.mrb[0].mxu0 %vm258_vm0, %v254_v28  ;;  %v539_v59 = vld [vmem:[%s2857_s2 + $0x18] sm:$0xff]  ;;  %v462_v4 = vld [vmem:[%s2859_s4] sm:$0xff]  ;;  %v1936_v8 = vpack.c.bf16 %v538_v61, %v536_v60  ;;  %v542_v13 = vld [vmem:[%s2857_s2 + $0x30] sm:$0xff]  ;;  %v2646_v21 = vpack.i.bf16 %v2482_v25, %v2477_v24  ;;  %v2662_v24 = vpack.i.bf16 %v391_v48, %v390_v47 }
  0x14   : > { %341 = vmatprep.mubr.f32.mxu0 %v2322_v7  ;;  %1882 = vmatprep.subr.mxu0 %v2322_v7  ;;  %v543_v0 = vld [vmem:[%s2857_s2 + $0x38] sm:$0xff]  ;;  %v1934_v2 = vpack.c.bf16 %v539_v59, %v537_v58  ;;  %v540_v12 = vld [vmem:[%s2857_s2 + $0x20] sm:$0xff]  ;;  %v545_v15 = vld [vmem:[%s2857_s2 + $0x48] sm:$0xff]  ;;  %v2666_v25 = vpack.i.bf16 %v2401_v6, %v2396_v5  ;;  %v2672_v28 = vpack.i.bf16 %v2416_v11, %v2411_v10 }
  0x15   : > { %v1938_v9 = vpack.c.bf16 %v543_v0, %v541_v63  ;;  %v1940_v14 = vpack.c.bf16 %v542_v13, %v540_v12  ;;  %2103 = vrot.lane.b32.xlu0 %v2640_v20, %s2324_s11  ;;  %v621_v18 = vld [vmem:[%s2860_s5] sm:$0xff]  ;;  %2293 = vset.pattern.permute.xlu1 %v2325_v19  ;;  %v2680_v5 = vpack.i.bf16 %v2443_v17, %v2438_v16 }
  0x16   : > { %1917 = vmatpush3.bf16.msra.mxu1 %v1916_v29  ;;  %2132 = vset.pattern.permute.xlu0 %v2325_v19  ;;  %v2688_v10 = vpack.i.bf16 %v2472_v23, %v2467_v22  ;;  %v2696_v11 = vpack.i.bf16 %v2499_v32, %v2494_v31  ;;  %v2704_v16 = vpack.i.bf16 %v2529_v39, %v2524_v38  ;;  %v984_v23 = vld [vmem:[%s2860_s5 + $0x8] sm:$0xff]  ;;  %v1640_v32 = vld [vmem:[%s2860_s5 + $0x18] sm:$0xff] }
  0x17   : > { %1919 = vmatprep.subr.bf16.mxu1 %v1918_v30  ;;  %1719 = vmatmul.mubr.msk.f32.gmra.mrb[2].mxu0 %vm258_vm0, %v255_v35  ;;  %v2712_v17 = vpack.i.bf16 %v2540_v41, %v2535_v40  ;;  %v2720_v22 = vpack.i.bf16 %v2558_v46, %v2553_v45  ;;  %v2731_v31 = vpack.i.bf16 %v2578_v52, %v2573_v51 }
  0x18   : > { %347 = vmatprep.mubr.f32.mxu0 %v2322_v7  ;;  %2083 = vrot.lane.b32.xlu1 %v2666_v25, %s2324_s11 }
  0x19   : > { %2113 = vrot.lane.b32.xlu0 %v2646_v21, %s2324_s11 }
  0x1a   : > { %1921 = vmatpush3.bf16.msra.mxu1 %v1920_v36 }
  0x1b   : > { %1923 = vmatprep.subr.bf16.mxu1 %v1922_v37  ;;  %1720 = vmatmul.mubr.msk.f32.gmra.mrb[4].mxu0 %vm258_vm0, %v256_v42 }
  0x1c   : > { %353 = vmatprep.mubr.f32.mxu0 %v2322_v7  ;;  %2088 = vrot.lane.b32.xlu1 %v2672_v28, %s2324_s11 }
  0x1d   : > { %2123 = vrot.lane.b32.xlu0 %v2652_v26, %s2324_s11 }
  0x1e   : > { %1925 = vmatpush3.bf16.msra.mxu1 %v1924_v43 }
  0x1f   : > { %1927 = vmatprep.subr.bf16.mxu1 %v1926_v44  ;;  %1721 = vmatmul.mubr.msk.f32.gmra.mrb[6].mxu0 %vm258_vm0, %v257_v54 }
  0x20   : > { %1884 = vmatprep.mubr.msk.f32.mxu0 %vm2323_vm1, %v2322_v7  ;;  %2098 = vrot.lane.b32.xlu1 %v2680_v5, %s2324_s11 }
  0x21   : > { %624 = vperm.xlu0 %2132, %v621_v18  }
  0x22   : > { %1929 = vmatpush3.bf16.msra.mxu1 %v1928_v49 }
  0x23   : > { %1931 = vmatprep.subr.bf16.mxu1 %v1930_v50 }
  0x24   : > { %2108 = vrot.lane.b32.xlu1 %v2688_v10, %s2324_s11 }
  0x25   : > { %2144 = vrot.lane.b32.xlu0 %v2662_v24, %s2324_s11 }
  0x26   : > { %1933 = vmatpush3.bf16.msra.mxu1 %v1932_v53 }
  0x28   : > { %2118 = vrot.lane.b32.xlu1 %v2696_v11, %s2324_s11 }
  0x29   : > { %457 = vmatmul.mubr.f32.vlgmr.msra.gmra.mrb[0].mxu1 %v252_v27  ;;  %v544_v27 = vld [vmem:[%s2857_s2 + $0x40] sm:$0xff]  ;;  %2154 = vrot.lane.b32.xlu0 %v2590_v55, %s2326_s16 }
  0x2c   : > { %2128 = vrot.lane.b32.xlu1 %v2704_v16, %s2324_s11 }
  0x2d   : > { %2164 = vrot.lane.b32.xlu0 %v2666_v25, %s2326_s16 }
  0x30   : > { %2134 = vrot.lane.b32.xlu1 %v2712_v17, %s2324_s11 }
  0x31   : > { %2174 = vrot.lane.b32.xlu0 %v2602_v57, %s2326_s16 }
  0x34   : > { %2139 = vrot.lane.b32.xlu1 %v2720_v22, %s2324_s11 }
  0x35   : > { %2184 = vrot.lane.b32.xlu0 %v2640_v20, %s2326_s16 }
  0x38   : > { %2149 = vrot.lane.b32.xlu1 %v2731_v31, %s2324_s11 }
  0x39   : > { %2194 = vrot.lane.b32.xlu0 %v2646_v21, %s2326_s16 }
  0x3c   : > { %2159 = vrot.lane.b32.xlu1 %v2596_v56, %s2326_s16 }
  0x3d   : > { %2204 = vrot.lane.b32.xlu0 %v2652_v26, %s2326_s16 }
  0x40   : > { %2169 = vrot.lane.b32.xlu1 %v2672_v28, %s2326_s16 }
  0x41   : > { %987 = vperm.xlu0 %2132, %v984_v23  }
  0x44   : > { %2179 = vrot.lane.b32.xlu1 %v2680_v5, %s2326_s16 }
  0x45   : > { %2219 = vrot.lane.b32.xlu0 %v2720_v22, %s2326_s16 }
  0x48   : > { %2189 = vrot.lane.b32.xlu1 %v2688_v10, %s2326_s16 }
  0x49   : > { %2229 = vrot.lane.b32.xlu0 %v2731_v31, %s2326_s16 }
  0x4c   : > { %2199 = vrot.lane.b32.xlu1 %v2696_v11, %s2326_s16 }
  0x4d   : > { %2239 = vrot.lane.b32.xlu0 %v2596_v56, %s2327_s20 }
  0x50   : > { %2209 = vrot.lane.b32.xlu1 %v2704_v16, %s2326_s16 }
  0x51   : > { %2249 = vrot.lane.b32.xlu0 %v2672_v28, %s2327_s20 }
  0x54   : > { %2214 = vrot.lane.b32.xlu1 %v2712_v17, %s2326_s16 }
  0x55   : > { %2259 = vrot.lane.b32.xlu0 %v2680_v5, %s2327_s20 }
  0x58   : > { %2224 = vrot.lane.b32.xlu1 %v2662_v24, %s2326_s16 }
  0x59   : > { %2269 = vrot.lane.b32.xlu0 %v2688_v10, %s2327_s20 }
  0x5c   : > { %2234 = vrot.lane.b32.xlu1 %v2590_v55, %s2327_s20 }
  0x5d   : > { %2279 = vrot.lane.b32.xlu0 %v2696_v11, %s2327_s20 }
  0x60   : > { %2244 = vrot.lane.b32.xlu1 %v2666_v25, %s2327_s20 }
  0x61   : > { %2289 = vrot.lane.b32.xlu0 %v2704_v16, %s2327_s20 }
  0x64   : > { %2254 = vrot.lane.b32.xlu1 %v2602_v57, %s2327_s20 }
  0x65   : > { %2295 = vrot.lane.b32.xlu0 %v2712_v17, %s2327_s20 }
  0x68   : > { %2264 = vrot.lane.b32.xlu1 %v2640_v20, %s2327_s20 }
  0x69   : > { %2305 = vrot.lane.b32.xlu0 %v2662_v24, %s2327_s20 }
  0x6c   : > { %2274 = vrot.lane.b32.xlu1 %v2646_v21, %s2327_s20 }
  0x6d   : > { %1643 = vperm.xlu0 %2132, %v1640_v32  }
  0x70   : > { %2284 = vrot.lane.b32.xlu1 %v2652_v26, %s2327_s20 }
  0x7a   : > { %v2074_v29 = vpop.permute.xlu0 %2073 }
  0x7b   : > { %v2076_v30 = vunpack.i.h.bf16 %v2074_v29  ;;  %v2075_v33 = vunpack.i.l.bf16 %v2074_v29 }
  0x7d   : > { %v1942_v6 = vpack.c.bf16 %v2076_v30, %v2075_v33 }
  0x7e   : > { %v2079_v34 = vpop.permute.xlu0 %2078 }
  0x7f   : > { %v2081_v39 = vunpack.i.h.bf16 %v2079_v34  ;;  %v2080_v40 = vunpack.i.l.bf16 %v2079_v34 }
  0x81   : > { %v1944_v45 = vpack.c.bf16 %v2081_v39, %v2080_v40 }
  0x82   : > { %v2094_v35 = vpop.permute.xlu0 %2093 }
  0x83   : > { %v2096_v48 = vunpack.i.h.bf16 %v2094_v35  ;;  %v2095_v49 = vunpack.i.l.bf16 %v2094_v35 }
  0x85   : > { %v1950_v61 = vpack.c.bf16 %v2096_v48, %v2095_v49 }
  0x87   : > { %v2104_v36 = vpop.permute.xlu0 %2103 }
  0x88   : > { %v2105_v63 = vunpack.i.l.bf16 %v2104_v36 }
  0x8a   : > { %v2084_v38 = vpop.permute.xlu1 %2083 }
  0x8b   : > { %v2114_v37 = vpop.permute.xlu0 %2113  ;;  %v2086_v41 = vunpack.i.h.bf16 %v2084_v38  ;;  %v2085_v42 = vunpack.i.l.bf16 %v2084_v38 }
  0x8d   : > { %v1946_v50 = vpack.c.bf16 %v2086_v41, %v2085_v42 }
  0x8e   : > { %v2089_v44 = vpop.permute.xlu1 %2088 }
  0x8f   : > { %v2124_v43 = vpop.permute.xlu0 %2123  ;;  %v2091_v46 = vunpack.i.h.bf16 %v2089_v44  ;;  %v2090_v47 = vunpack.i.l.bf16 %v2089_v44 }
  0x90   : > { %v2126_v29 = vunpack.i.h.bf16 %v2124_v43  ;;  %v2125_v30 = vunpack.i.l.bf16 %v2124_v43 }
  0x91   : > { %v1948_v58 = vpack.c.bf16 %v2091_v46, %v2090_v47 }
  0x92   : > { %v2099_v52 = vpop.permute.xlu1 %2098 }
  0x93   : > { %v2101_v59 = vunpack.i.h.bf16 %v2099_v52  ;;  %v2100_v60 = vunpack.i.l.bf16 %v2099_v52 }
  0x96   : > { %v2109_v0 = vpop.permute.xlu1 %2108 }
  0x9a   : > { %v2119_v13 = vpop.permute.xlu1 %2118 }
  0x9b   : > { %v2121_v18 = vunpack.i.h.bf16 %v2119_v13  ;;  %v2120_v19 = vunpack.i.l.bf16 %v2119_v13 }
  0x9d   : > { %v1960_v34 = vpack.c.bf16 %v2121_v18, %v2120_v19 }
  0x9e   : > { %v2129_v23 = vpop.permute.xlu1 %2128 }
  0x9f   : > { %v2131_v35 = vunpack.i.h.bf16 %v2129_v23 }
  0xa0   : > { %v2758_v54 = vpop.permute.xlu0 %624 }
  0xa2   : > { %v2135_v38 = vpop.permute.xlu1 %2134 }
  0xa3   : > { %v2137_v39 = vunpack.i.h.bf16 %v2135_v38  ;;  %v2136_v40 = vunpack.i.l.bf16 %v2135_v38 }
  0xa5   : > { %v1966_v43 = vpack.c.bf16 %v2137_v39, %v2136_v40 }
  0xfc   : > { %v1766_v62 = vpop.f32.mrb[0].mxu1 }
  0xfd   : > { %v1767_v1 = vpop.f32.mrb[1].mxu1 }
  0xfe   : > { %v1768_v3 = vadd.f32 %v1767_v1, %v1766_v62  ;;  %v2106_v62 = vunpack.i.h.bf16 %v2104_v36  ;;  %v2116_v1 = vunpack.i.h.bf16 %v2114_v37  ;;  %v2130_v36 = vunpack.i.l.bf16 %v2129_v23 }
 0x100   : > { %1883 = vmatpush3.msra.mxu0 %v1768_v3  ;;  %v2145_v3 = vpop.permute.xlu0 %2144  ;;  %v1954_v12 = vpack.c.bf16 %v2106_v62, %v2105_v63  ;;  %v1964_v41 = vpack.c.bf16 %v2131_v35, %v2130_v36 }
 0x101   : > { %1885 = vmatmul.mubr.msk.f32.vlgmr.msra.gmra.mrb[8].mxu0 %vm258_vm0, %v462_v4  ;;  %1935 = vmatprep.subr.bf16.mxu0 %v1934_v2  ;;  %v2115_v2 = vunpack.i.l.bf16 %v2114_v37  ;;  %v1952_v4 = vpack.c.bf16 %v2101_v59, %v2100_v60  ;;  %v1962_v37 = vpack.c.bf16 %v2126_v29, %v2125_v30  ;;  %v2147_v42 = vunpack.i.h.bf16 %v2145_v3 }
 0x102   : > { %1937 = vmatpush1.bf16.msra.mxu0 %v1936_v8  ;;  %614 = vmatprep.mubr.f32.mxu0 %v2322_v7  ;;  %v2111_v8 = vunpack.i.h.bf16 %v2109_v0  ;;  %v2146_v44 = vunpack.i.l.bf16 %v2145_v3 }
 0x103   : > { %1939 = vmatprep.subr.bf16.mxu0 %v1938_v9  ;;  %v2110_v9 = vunpack.i.l.bf16 %v2109_v0  ;;  %v906_v0 = vld [vmem:[%s2857_s2 + $0x58] sm:$0xff] }
 0x104   : > { %v1970_v48 = vpack.c.bf16 %v2147_v42, %v2146_v44 }
 0x106   : > { %1941 = vmatpush1.bf16.msra.mxu0 %v1940_v14  ;;  %v1958_v14 = vpack.c.bf16 %v2116_v1, %v2115_v2  ;;  %v908_v1 = vld [vmem:[%s2857_s2 + $0x68] sm:$0xff]  ;;  %v905_v2 = vld [vmem:[%s2857_s2 + $0x50] sm:$0xff] }
 0x107   : > { %558 = vmatprep.subr.mxu0 %v545_v15  ;;  %v2155_v15 = vpop.permute.xlu0 %2154 }
 0x108   : > { %v2157_v33 = vunpack.i.h.bf16 %v2155_v15 }
 0x10a   : > { %559 = vmatpush1.msra.mxu0 %v544_v27  ;;  %v1956_v27 = vpack.c.bf16 %v2111_v8, %v2110_v9  ;;  %v1974_v8 = vpack.c.bf16 %v908_v1, %v906_v0 }
 0x10b   : > { %1943 = vmatprep.subr.bf16.mxu0 %v1942_v6  ;;  %v2156_v6 = vunpack.i.l.bf16 %v2155_v15  ;;  %v2165_v56 = vpop.permute.xlu0 %2164 }
 0x10c   : > { %v2167_v15 = vunpack.i.h.bf16 %v2165_v56  ;;  %v2166_v5 = vunpack.i.l.bf16 %v2165_v56 }
 0x10d   : > { %v1978_v32 = vpack.c.bf16 %v2157_v33, %v2156_v6 }
 0x10e   : > { %v1982_v29 = vpack.c.bf16 %v2167_v15, %v2166_v5 }
 0x10f   : > { %1979 = vmatprep.subr.bf16.mxu1 %v1978_v32  ;;  %v2175_v28 = vpop.permute.xlu0 %2174 }
 0x110   : > { %v2177_v11 = vunpack.i.h.bf16 %v2175_v28  ;;  %v2176_v30 = vunpack.i.l.bf16 %v2175_v28 }
 0x112   : > { %v1986_v17 = vpack.c.bf16 %v2177_v11, %v2176_v30 }
 0x1d4   : > { %v532_v51 = vpop.f32.mrb[8].mxu0 }
 0x1d5   : > { %1723 = vmatmul.mubr.msk.f32.vlgmr.msra.gmra.mrb[0].mxu0 %vm546_vm2, %v532_v51  ;;  %v1886_v53 = vpop.f32.mrb[9].mxu0 }
 0x1d6   : > { %1945 = vmatpush3.bf16.msra.mxu0 %v1944_v45  ;;  %v2140_v45 = vpop.permute.xlu1 %2139 }
 0x1d7   : > { %1947 = vmatprep.subr.bf16.mxu0 %v1946_v50  ;;  %v2142_v46 = vunpack.i.h.bf16 %v2140_v45  ;;  %v2141_v47 = vunpack.i.l.bf16 %v2140_v45 }
 0x1d9   : > { %v1968_v49 = vpack.c.bf16 %v2142_v46, %v2141_v47 }
 0x1da   : > { %1949 = vmatpush3.bf16.msra.mxu0 %v1948_v58  ;;  %v2150_v50 = vpop.permute.xlu1 %2149 }
 0x1db   : > { %1951 = vmatprep.subr.bf16.mxu0 %v1950_v61  ;;  %v2152_v51 = vunpack.i.h.bf16 %v2150_v50  ;;  %v2151_v52 = vunpack.i.l.bf16 %v2150_v50 }
 0x1dd   : > { %v1972_v53 = vpack.c.bf16 %v2152_v51, %v2151_v52 }
 0x1de   : > { %1953 = vmatpush3.bf16.msra.mxu0 %v1952_v4 }
 0x1df   : > { %1955 = vmatprep.subr.bf16.mxu0 %v1954_v12  ;;  %v831_v12 = vld [vmem:[%s2859_s4 + $0x8] sm:$0xff] }
 0x1e2   : > { %1957 = vmatpush3.bf16.msra.mxu0 %v1956_v27  ;;  %v2160_v27 = vpop.permute.xlu1 %2159 }
 0x1e3   : > { %1959 = vmatprep.subr.bf16.mxu0 %v1958_v14  ;;  %v2185_v14 = vpop.permute.xlu0 %2184  ;;  %v2162_v10 = vunpack.i.h.bf16 %v2160_v27  ;;  %v2161_v19 = vunpack.i.l.bf16 %v2160_v27 }
 0x1e4   : > { %v2187_v32 = vunpack.i.h.bf16 %v2185_v14  ;;  %v2186_v24 = vunpack.i.l.bf16 %v2185_v14 }
 0x1e5   : > { %v1980_v33 = vpack.c.bf16 %v2162_v10, %v2161_v19 }
 0x1e6   : > { %1961 = vmatpush3.bf16.msra.mxu0 %v1960_v34  ;;  %v2170_v16 = vpop.permute.xlu1 %2169  ;;  %v1990_v39 = vpack.c.bf16 %v2187_v32, %v2186_v24  ;;  %v1162_v32 = vld [vmem:[%s2859_s4 + $0x10] sm:$0xff]  ;;  %v1237_v24 = vld [vmem:[%s2857_s2 + $0x78] sm:$0xff] }
 0x1e7   : > { %1963 = vmatprep.subr.bf16.mxu0 %v1962_v37  ;;  %v2195_v18 = vpop.permute.xlu0 %2194  ;;  %v2172_v6 = vunpack.i.h.bf16 %v2170_v16  ;;  %v2171_v23 = vunpack.i.l.bf16 %v2170_v16  ;;  %1981 = vmatpush3.bf16.msra.mxu1 %v1980_v33 }
 0x1e8   : > { %1983 = vmatprep.subr.bf16.mxu1 %v1982_v29  ;;  %v2197_v40 = vunpack.i.h.bf16 %v2195_v18 }
 0x1e9   : > { %v1984_v35 = vpack.c.bf16 %v2172_v6, %v2171_v23 }
 0x1ea   : > { %1965 = vmatpush3.bf16.msra.mxu0 %v1964_v41  ;;  %v2180_v36 = vpop.permute.xlu1 %2179  ;;  %v2196_v41 = vunpack.i.l.bf16 %v2195_v18 }
 0x1eb   : > { %1967 = vmatprep.subr.bf16.mxu0 %v1966_v43  ;;  %v2205_v34 = vpop.permute.xlu0 %2204  ;;  %v2182_v37 = vunpack.i.h.bf16 %v2180_v36  ;;  %v2181_v38 = vunpack.i.l.bf16 %v2180_v36  ;;  %1985 = vmatpush3.bf16.msra.mxu1 %v1984_v35  ;;  %v1312_v35 = vld [vmem:[%s2860_s5 + $0x10] sm:$0xff] }
 0x1ec   : > { %1987 = vmatprep.subr.bf16.mxu1 %v1986_v17  ;;  %v2207_v50 = vunpack.i.h.bf16 %v2205_v34  ;;  %v2206_v51 = vunpack.i.l.bf16 %v2205_v34  ;;  %v1236_v34 = vld [vmem:[%s2857_s2 + $0x70] sm:$0xff]  ;;  %1315 = vperm.xlu1 %2293, %v1312_v35  }
 0x1ed   : > { %v1988_v44 = vpack.c.bf16 %v2182_v37, %v2181_v38 }
 0x1ee   : > { %1969 = vmatpush3.bf16.msra.mxu0 %v1968_v49  ;;  %v2190_v45 = vpop.permute.xlu1 %2189  ;;  %v1994_v49 = vpack.c.bf16 %v2197_v40, %v2196_v41 }
 0x1ef   : > { %1971 = vmatprep.subr.bf16.mxu0 %v1970_v48  ;;  %v988_v46 = vpop.permute.xlu0 %987  ;;  %v2192_v47 = vunpack.i.h.bf16 %v2190_v45  ;;  %v2191_v48 = vunpack.i.l.bf16 %v2190_v45  ;;  %1989 = vmatpush3.bf16.msra.mxu1 %v1988_v44 }
 0x1f0   : > { %1991 = vmatprep.subr.bf16.mxu1 %v1990_v39  ;;  %2300 = vrot.lane.b32.xlu1 %v2720_v22, %s2327_s20 }
 0x1f1   : > { %v1992_v52 = vpack.c.bf16 %v2192_v47, %v2191_v48 }
 0x1f2   : > { %1973 = vmatpush3.bf16.msra.mxu0 %v1972_v53  ;;  %v2200_v53 = vpop.permute.xlu1 %2199 }
 0x1f3   : > { %1887 = vmatprep.subr.mxu0 %v2322_v7  ;;  %1993 = vmatpush3.bf16.msra.mxu1 %v1992_v52 }
 0x1f4   : > { %1995 = vmatprep.subr.bf16.mxu1 %v1994_v49  ;;  %2310 = vrot.lane.b32.xlu1 %v2731_v31, %s2327_s20 }
 0x2a8   : > { %v616_v58 = vpop.f32.mrb[0].mxu0 }
 0x2a9   : > { %v2042_v59 = vadd.f32 %v2758_v54, %v616_v58  ;;  %v618_v60 = vpop.f32.mrb[1].mxu0  ;;  %v2202_v58 = vunpack.i.h.bf16 %v2200_v53 }
 0x2aa   : > { %v2043_v61 = vadd.f32 %v2758_v54, %v618_v60  ;;  %v907_v54 = vld [vmem:[%s2857_s2 + $0x60] sm:$0xff]  ;;  %v1998_v60 = vpack.c.bf16 %v2207_v50, %v2206_v51 }
 0x2ab   : > { %v631_v63 = vmax.f32 %v2042_v59, 0.0  ;;  %v1976_v13 = vpack.c.bf16 %v907_v54, %v905_v2  ;;  %v2201_v59 = vunpack.i.l.bf16 %v2200_v53 }
 0x2ac   : > { %v632_v62 = vmax.f32 %v2043_v61, 0.0  ;;  %v2220_v61 = vpop.permute.xlu0 %2219 }
 0x2ad   : > { %v2222_v2 = vunpack.i.h.bf16 %v2220_v61  ;;  %v2221_v54 = vunpack.i.l.bf16 %v2220_v61 }
 0x2ae   : > { %825 = vmatprep.mubr.f32.mxu0 %v632_v62  ;;  %v1996_v62 = vpack.c.bf16 %v2202_v58, %v2201_v59 }
 0x2af   : > { %826 = vmatmul.mubr.f32.vlgmr.msra.gmra.mrb[10].mxu0 %v631_v63  ;;  %v2210_v63 = vpop.permute.xlu1 %2209 }
 0x2b0   : > { %1889 = vmatprep.mubr.msk.f32.mxu0 %vm2323_vm1, %v2322_v7  ;;  %v2212_v0 = vunpack.i.h.bf16 %v2210_v63  ;;  %v2211_v1 = vunpack.i.l.bf16 %v2210_v63  ;;  %1997 = vmatpush3.bf16.msra.mxu1 %v1996_v62 }
 0x2b1   : > { %1999 = vmatprep.subr.bf16.mxu1 %v1998_v60 }
 0x382   : > { %v1803_v3 = vpop.f32.mrb[10].mxu0 }
 0x383   : > { %v1804_v4 = vpop.f32.mrb[11].mxu0 }
 0x384   : > { %v1805_v9 = vadd.f32 %v1804_v4, %v1803_v3  ;;  %v2000_v3 = vpack.c.bf16 %v2212_v0, %v2211_v1  ;;  %v2215_v4 = vpop.permute.xlu1 %2214 }
 0x386   : > { %1888 = vmatpush3.msra.mxu0 %v1805_v9  ;;  %v2217_v9 = vunpack.i.h.bf16 %v2215_v4  ;;  %2001 = vmatpush3.bf16.msra.mxu1 %v2000_v3 }
 0x387   : > { %1890 = vmatmul.mubr.msk.f32.vlgmr.msra.gmra.mrb[12].mxu0 %vm258_vm0, %v831_v12  ;;  %1975 = vmatprep.subr.bf16.mxu0 %v1974_v8  ;;  %v2230_v8 = vpop.permute.xlu0 %2229  ;;  %v2216_v12 = vunpack.i.l.bf16 %v2215_v4 }
 0x388   : > { %1977 = vmatpush1.bf16.msra.mxu0 %v1976_v13  ;;  %977 = vmatprep.mubr.f32.mxu0 %v2322_v7  ;;  %v2004_v13 = vpack.c.bf16 %v2222_v2, %v2221_v54  ;;  %v2232_v56 = vunpack.i.h.bf16 %v2230_v8  ;;  %v2231_v28 = vunpack.i.l.bf16 %v2230_v8  ;;  %v2225_v15 = vpop.permute.xlu1 %2224 }
 0x389   : > { %1892 = vmatprep.subr.mxu0 %v2322_v7  ;;  %v2002_v14 = vpack.c.bf16 %v2217_v9, %v2216_v12  ;;  %v2227_v5 = vunpack.i.h.bf16 %v2225_v15  ;;  %v2226_v27 = vunpack.i.l.bf16 %v2225_v15 }
 0x38a   : > { %v2008_v18 = vpack.c.bf16 %v2232_v56, %v2231_v28 }
 0x38b   : > { %2003 = vmatprep.subr.bf16.mxu1 %v2002_v14  ;;  %v2006_v10 = vpack.c.bf16 %v2227_v5, %v2226_v27  ;;  %v2240_v55 = vpop.permute.xlu0 %2239 }
 0x38c   : > { %2005 = vmatpush3.bf16.msra.mxu1 %v2004_v13  ;;  %v2242_v25 = vunpack.i.h.bf16 %v2240_v55  ;;  %v2241_v36 = vunpack.i.l.bf16 %v2240_v55  ;;  %v2235_v37 = vpop.permute.xlu1 %2234 }
 0x38d   : > { %2007 = vmatprep.subr.bf16.mxu1 %v2006_v10  ;;  %v2237_v38 = vunpack.i.h.bf16 %v2235_v37  ;;  %v2236_v26 = vunpack.i.l.bf16 %v2235_v37 }
 0x38e   : > { %v2012_v39 = vpack.c.bf16 %v2242_v25, %v2241_v36 }
 0x38f   : > { %v2250_v57 = vpop.permute.xlu0 %2249 }
 0x390   : > { %2009 = vmatpush3.bf16.msra.mxu1 %v2008_v18  ;;  %v2252_v40 = vunpack.i.h.bf16 %v2250_v57  ;;  %v2251_v41 = vunpack.i.l.bf16 %v2250_v57  ;;  %v2245_v44 = vpop.permute.xlu1 %2244 }
 0x391   : > { %v2247_v45 = vunpack.i.h.bf16 %v2245_v44  ;;  %v2246_v22 = vunpack.i.l.bf16 %v2245_v44  ;;  %v1490_v44 = vld [vmem:[%s2859_s4 + $0x18] sm:$0xff] }
 0x393   : > { %v2260_v20 = vpop.permute.xlu0 %2259  ;;  %v2014_v48 = vpack.c.bf16 %v2247_v45, %v2246_v22  ;;  %v1564_v45 = vld [vmem:[%s2857_s2 + $0x80] sm:$0xff] }
 0x394   : > { %v2262_v31 = vunpack.i.h.bf16 %v2260_v20  ;;  %v2261_v47 = vunpack.i.l.bf16 %v2260_v20  ;;  %v2255_v49 = vpop.permute.xlu1 %2254 }
 0x395   : > { %v2257_v50 = vunpack.i.h.bf16 %v2255_v49  ;;  %v2256_v51 = vunpack.i.l.bf16 %v2255_v49 }
 0x396   : > { %v2020_v52 = vpack.c.bf16 %v2262_v31, %v2261_v47 }
 0x397   : > { %v2270_v21 = vpop.permute.xlu0 %2269  ;;  %v2018_v61 = vpack.c.bf16 %v2257_v50, %v2256_v51 }
 0x398   : > { %v2272_v53 = vunpack.i.h.bf16 %v2270_v21  ;;  %v2271_v58 = vunpack.i.l.bf16 %v2270_v21  ;;  %v2265_v63 = vpop.permute.xlu1 %2264 }
 0x399   : > { %v2267_v0 = vunpack.i.h.bf16 %v2265_v63  ;;  %v2266_v1 = vunpack.i.l.bf16 %v2265_v63 }
 0x39a   : > { %v2024_v2 = vpack.c.bf16 %v2272_v53, %v2271_v58 }
 0x39b   : > { %v2022_v4 = vpack.c.bf16 %v2267_v0, %v2266_v1 }
 0x39c   : > { %v2275_v8 = vpop.permute.xlu1 %2274 }
 0x39d   : > { %v2277_v9 = vunpack.i.h.bf16 %v2275_v8  ;;  %v2276_v12 = vunpack.i.l.bf16 %v2275_v8 }
 0x39f   : > { %v2026_v27 = vpack.c.bf16 %v2277_v9, %v2276_v12 }
 0x3a0   : > { %v2285_v18 = vpop.permute.xlu1 %2284 }
 0x3a1   : > { %v2287_v10 = vunpack.i.h.bf16 %v2285_v18 }
 0x45a   : > { %v901_v42 = vpop.f32.mrb[12].mxu0 }
 0x45b   : > { %1725 = vmatmul.mubr.msk.f32.vlgmr.msra.gmra.mrb[2].mxu0 %vm909_vm3, %v901_v42  ;;  %v1891_v43 = vpop.f32.mrb[13].mxu0  ;;  %v2010_v42 = vpack.c.bf16 %v2237_v38, %v2236_v26 }
 0x45c   : > { %1894 = vmatprep.mubr.msk.f32.mxu0 %vm2323_vm1, %v2322_v7  ;;  %v2280_v43 = vpop.permute.xlu0 %2279 }
 0x45d   : > { %2011 = vmatprep.subr.bf16.mxu1 %v2010_v42  ;;  %v2282_v54 = vunpack.i.h.bf16 %v2280_v43  ;;  %v2281_v3 = vunpack.i.l.bf16 %v2280_v43  ;;  %v1565_v43 = vld [vmem:[%s2857_s2 + $0x88] sm:$0xff] }
 0x45f   : > { %v2028_v13 = vpack.c.bf16 %v2282_v54, %v2281_v3 }
 0x460   : > { %v2290_v59 = vpop.permute.xlu0 %2289 }
 0x461   : > { %v2292_v56 = vunpack.i.h.bf16 %v2290_v59  ;;  %v2291_v28 = vunpack.i.l.bf16 %v2290_v59 }
 0x464   : > { %v2296_v14 = vpop.permute.xlu0 %2295 }
 0x465   : > { %v2298_v15 = vunpack.i.h.bf16 %v2296_v14  ;;  %v2297_v5 = vunpack.i.l.bf16 %v2296_v14 }
 0x52e   : > { %v979_v19 = vpop.f32.mrb[2].mxu0 }
 0x52f   : > { %v2044_v29 = vadd.f32 %v988_v46, %v979_v19  ;;  %v981_v11 = vpop.f32.mrb[3].mxu0  ;;  %v2286_v19 = vunpack.i.l.bf16 %v2285_v18 }
 0x530   : > { %v2045_v30 = vadd.f32 %v988_v46, %v981_v11  ;;  %v2016_v46 = vpack.c.bf16 %v2252_v40, %v2251_v41  ;;  %v2034_v11 = vpack.c.bf16 %v2298_v15, %v2297_v5 }
 0x531   : > { %v994_v16 = vmax.f32 %v2044_v29, 0.0  ;;  %v2032_v29 = vpack.c.bf16 %v2292_v56, %v2291_v28 }
 0x532   : > { %v995_v33 = vmax.f32 %v2045_v30, 0.0  ;;  %v2030_v30 = vpack.c.bf16 %v2287_v10, %v2286_v19 }
 0x534   : > { %1156 = vmatprep.mubr.f32.mxu1 %v995_v33  ;;  %v1316_v33 = vpop.permute.xlu1 %1315 }
 0x535   : > { %1157 = vmatmul.mubr.f32.vlgmr.msra.gmra.mrb[2].mxu1 %v994_v16  ;;  %v2306_v16 = vpop.permute.xlu0 %2305 }
 0x536   : > { %2013 = vmatpush3.bf16.msra.mxu1 %v2012_v39 }
 0x537   : > { %2015 = vmatprep.subr.bf16.mxu1 %v2014_v48 }
 0x539   : > { %v1644_v31 = vpop.permute.xlu0 %1643 }
 0x53a   : > { %2017 = vmatpush3.bf16.msra.mxu1 %v2016_v46 }
 0x53b   : > { %2019 = vmatprep.subr.bf16.mxu1 %v2018_v61 }
 0x53e   : > { %2021 = vmatpush3.bf16.msra.mxu1 %v2020_v52 }
 0x53f   : > { %2023 = vmatprep.subr.bf16.mxu1 %v2022_v4 }
 0x542   : > { %2025 = vmatpush3.bf16.msra.mxu1 %v2024_v2 }
 0x543   : > { %2027 = vmatprep.subr.bf16.mxu1 %v2026_v27 }
 0x546   : > { %2029 = vmatpush3.bf16.msra.mxu1 %v2028_v13 }
 0x547   : > { %2031 = vmatprep.subr.bf16.mxu1 %v2030_v30 }
 0x54a   : > { %2033 = vmatpush3.bf16.msra.mxu1 %v2032_v29 }
 0x54b   : > { %2035 = vmatprep.subr.bf16.mxu1 %v2034_v11 }
 0x608   : > { %v1840_v6 = vpop.f32.mrb[2].mxu1 }
 0x609   : > { %v1841_v23 = vpop.f32.mrb[3].mxu1 }
 0x60a   : > { %v1842_v17 = vadd.f32 %v1841_v23, %v1840_v6  ;;  %v2308_v6 = vunpack.i.h.bf16 %v2306_v16  ;;  %v2307_v23 = vunpack.i.l.bf16 %v2306_v16 }
 0x60c   : > { %1893 = vmatpush3.msra.mxu0 %v1842_v17  ;;  %v2301_v17 = vpop.permute.xlu1 %2300 }
 0x60d   : > { %1895 = vmatmul.mubr.msk.f32.vlgmr.msra.gmra.mrb[14].mxu0 %vm258_vm0, %v1162_v32  ;;  %1241 = vmatprep.subr.mxu0 %v1237_v24  ;;  %v2303_v32 = vunpack.i.h.bf16 %v2301_v17  ;;  %v2302_v24 = vunpack.i.l.bf16 %v2301_v17 }
 0x60e   : > { %1305 = vmatprep.mubr.f32.mxu0 %v2322_v7  ;;  %1242 = vmatpush1.msra.mxu0 %v1236_v34  ;;  %v2038_v34 = vpack.c.bf16 %v2308_v6, %v2307_v23 }
 0x60f   : > { %1897 = vmatprep.subr.mxu0 %v2322_v7  ;;  %v2036_v35 = vpack.c.bf16 %v2303_v32, %v2302_v24 }
 0x610   : > { %v2311_v55 = vpop.permute.xlu1 %2310 }
 0x611   : > { %v2313_v57 = vunpack.i.h.bf16 %v2311_v55  ;;  %v2312_v20 = vunpack.i.l.bf16 %v2311_v55  ;;  %2037 = vmatpush3.bf16.msra.mxu1 %v2036_v35 }
 0x612   : > { %2039 = vmatprep.subr.bf16.mxu1 %v2038_v34 }
 0x613   : > { %v2040_v25 = vpack.c.bf16 %v2313_v57, %v2312_v20 }
 0x615   : > { %2041 = vmatpush3.bf16.msra.mxu1 %v2040_v25 }
 0x6e0   : > { %v1232_v60 = vpop.f32.mrb[14].mxu0 }
 0x6e1   : > { %1727 = vmatmul.mubr.msk.f32.vlgmr.msra.gmra.mrb[4].mxu0 %vm258_vm0, %v1232_v60  ;;  %v1896_v62 = vpop.f32.mrb[15].mxu0 }
 0x6e2   : > { %1899 = vmatprep.mubr.msk.f32.mxu0 %vm2323_vm1, %v2322_v7 }
 0x7b4   : > { %v1307_v36 = vpop.f32.mrb[4].mxu0 }
 0x7b5   : > { %v2046_v21 = vadd.f32 %v1316_v33, %v1307_v36  ;;  %v1309_v37 = vpop.f32.mrb[5].mxu0 }
 0x7b6   : > { %v2047_v38 = vadd.f32 %v1316_v33, %v1309_v37 }
 0x7b7   : > { %v1322_v39 = vmax.f32 %v2046_v21, 0.0 }
 0x7b8   : > { %v1323_v26 = vmax.f32 %v2047_v38, 0.0 }
 0x7ba   : > { %1484 = vmatprep.mubr.f32.mxu1 %v1323_v26 }
 0x7bb   : > { %1485 = vmatmul.mubr.f32.vlgmr.msra.gmra.mrb[4].mxu1 %v1322_v39 }
 0x88e   : > { %v1877_v40 = vpop.f32.mrb[4].mxu1 }
 0x88f   : > { %v1878_v41 = vpop.f32.mrb[5].mxu1 }
 0x890   : > { %v1879_v42 = vadd.f32 %v1878_v41, %v1877_v40 }
 0x892   : > { %1898 = vmatpush3.msra.mxu0 %v1879_v42 }
 0x893   : > { %1900 = vmatmul.mubr.msk.f32.vlgmr.msra.gmra.mrb[16].mxu0 %vm258_vm0, %v1490_v44  ;;  %1569 = vmatprep.subr.mxu0 %v1565_v43 }
 0x894   : > { %1633 = vmatprep.mubr.f32.mxu0 %v2322_v7  ;;  %1570 = vmatpush1.msra.mxu0 %v1564_v45 }
 0x966   : > { %v1560_v22 = vpop.f32.mrb[16].mxu0 }
 0x967   : > { %1729 = vmatmul.mubr.msk.f32.vlgmr.msra.gmra.mrb[6].mxu0 %vm258_vm0, %v1560_v22  ;;  %v1901_v46 = vpop.f32.mrb[17].mxu0 }
 0xa3a   : > { %v1635_v47 = vpop.f32.mrb[6].mxu0 }
 0xa3b   : > { %v2048_v48 = vadd.f32 %v1644_v31, %v1635_v47  ;;  %v1637_v49 = vpop.f32.mrb[7].mxu0 }
 0xa3c   : > { %v2049_v50 = vadd.f32 %v1644_v31, %v1637_v49 }
 0xa3d   : > { %v1650_v7 = vmax.f32 %v2048_v48, 0.0 }
 0xa3e   : > { %v1651_v51 = vmax.f32 %v2049_v50, 0.0 }
 0xa3f   : > { %1652 = vst [vmem:[%s251_s29] sm:$0xff] %v1650_v7 }
 0xa40   : > { %1653 = vst [vmem:[%s251_s29 + $0x8] sm:$0xff] %v1651_v51 }
 0xa41 PF: > { %s16_s21 = sadd.s32 1, %s2320_s21  }
 0xa42   : > { %p13_p4 = scmp.ge.s32.totalorder %s16_s21, 4  }
 0xa44   :  { %15 = sbr.rel (!%p13_p4) target bundleno = 1 (0x1), region = 74 }

</bundles_post_ra>
